<compile_context>
chip_gen: v5e
topology: v5e:2x2
jax: 0.10.0
libtpu: 0.0.40
codegen_flags: <defaults>
</compile_context>

<pallas_src>
import jax
import jax.numpy as jnp
from jax.experimental import pallas as pl
from jax.experimental.pallas import tpu as pltpu

HIDDEN_SIZE = 60
CONSTELLATION_SIZE = 2  # BPSK


def _mlp_softmax_kernel(x_ref, w1t_ref, b1_ref, w2t_ref, b2_ref, o_ref):
    # x_ref: [tb, n_ant] (batch-major tile)
    x = x_ref[...]
    # Layer 1: [tb, n_ant] @ [n_ant, H] -> [tb, H], + bias, ReLU
    h = jnp.dot(x, w1t_ref[...], preferred_element_type=jnp.float32) + b1_ref[...]
    h = jnp.maximum(h, 0.0)
    # Layer 2: [tb, H] @ [H, S] -> [tb, S]
    logits = jnp.dot(h, w2t_ref[...], preferred_element_type=jnp.float32) + b2_ref[...]
    # Numerically stable softmax over the states axis (last dim).
    m = jnp.max(logits, axis=-1, keepdims=True)
    e = jnp.exp(logits - m)
    denom = jnp.sum(e, axis=-1, keepdims=True)
    o_ref[...] = (e / denom).astype(o_ref.dtype)


def _reference(rx, w1, b1, w2, b2):
    return jax.nn.softmax(jnp.maximum(rx @ w1.T + b1, 0.0) @ w2.T + b2, axis=-1)


def dnn_detector_forward(rx, w1, b1, w2, b2, *, block_b=8192, min_pallas_batch=512):
    """rx: [B, n_ant] f32.  w1: [H, n_ant], b1: [H], w2: [S, H], b2: [S] (torch layout).

    Returns soft_estimation: [B, S] f32.
    """
    B, n_ant = rx.shape
    n_states, hidden = w2.shape

    # Tiny batches: the fused XLA path beats any grid-step + padding overhead.
    if B < min_pallas_batch:
        return _reference(rx, w1, b1, w2, b2)

    # Batch tile: multiple of 128, capped at block_b, and capped again so that there
    # are >= 2 grid tiles when the batch allows (lets the "parallel" axis shard
    # across the two TensorCores on v7x; harmless on v5e/v6e).
    block_b = max(128, (int(block_b) // 128) * 128)
    b_round = pl.cdiv(B, 128) * 128
    tb = min(block_b, b_round)
    if b_round >= 256:
        half = pl.cdiv(pl.cdiv(b_round, 2), 128) * 128
        tb = max(128, min(tb, half))
    b_pad = pl.cdiv(B, tb) * tb

    # Batch-major input: only zero-pad the batch tail (no transpose).
    x = jnp.pad(rx, ((0, b_pad - B), (0, 0)))          # [b_pad, n_ant]
    w1t = w1.T                                          # [n_ant, H]   (tiny, one-time)
    w2t = w2.T                                          # [H, S]
    b1_r = b1.reshape(1, hidden)
    b2_r = b2.reshape(1, n_states)

    # VMEM budget: double-buffered x/out tiles + f32 intermediates (lane-padded to 128),
    # generous headroom; explicit so larger tiles still fit v5e's 16 MiB scoped default.
    vmem_est = tb * (2 * n_ant * 4 + 2 * n_states * 4 + 2 * 128 * 4) + (1 << 20)
    vmem_limit = int(min(max(2 * vmem_est, 24 << 20), 48 << 20))

    out = pl.pallas_call(
        _mlp_softmax_kernel,
        out_shape=jax.ShapeDtypeStruct((b_pad, n_states), jnp.float32),
        grid=(b_pad // tb,),
        in_specs=[
            pl.BlockSpec((tb, n_ant), lambda i: (i, 0)),        # x tile (batch-major)
            pl.BlockSpec((n_ant, hidden), lambda i: (0, 0)),    # W1^T (resident)
            pl.BlockSpec((1, hidden), lambda i: (0, 0)),        # b1   (resident)
            pl.BlockSpec((hidden, n_states), lambda i: (0, 0)), # W2^T (resident)
            pl.BlockSpec((1, n_states), lambda i: (0, 0)),      # b2   (resident)
        ],
        out_specs=pl.BlockSpec((tb, n_states), lambda i: (i, 0)),
        compiler_params=pltpu.CompilerParams(
            dimension_semantics=("parallel",),
            vmem_limit_bytes=vmem_limit,
        ),
    )(x, w1t, b1_r, w2t, b2_r)

    # Drop batch padding (plain slice, no transpose).
    return out[:B]


def init_params(key, n_ant, n_states, hidden=HIDDEN_SIZE):
    """Deterministic init mimicking nn.Linear default (uniform +/- 1/sqrt(fan_in)).

    Weights in torch layout: W [out, in], b [out].
    """
    k1, k2, k3, k4 = jax.random.split(key, 4)
    bnd1 = 1.0 / jnp.sqrt(n_ant)
    bnd2 = 1.0 / jnp.sqrt(hidden)
    w1 = jax.random.uniform(k1, (hidden, n_ant), jnp.float32, -bnd1, bnd1)
    b1 = jax.random.uniform(k2, (hidden,), jnp.float32, -bnd1, bnd1)
    w2 = jax.random.uniform(k3, (n_states, hidden), jnp.float32, -bnd2, bnd2)
    b2 = jax.random.uniform(k4, (n_states,), jnp.float32, -bnd2, bnd2)
    return w1, b1, w2, b2


if __name__ == "__main__":
    key = jax.random.PRNGKey(0)
    n_user, n_ant = 4, 4
    n_states = CONSTELLATION_SIZE ** n_ant  # 16

    k_x1, k_x2, k_x3, k_p = jax.random.split(key, 4)
    w1, b1, w2, b2 = init_params(k_p, n_ant, n_states)

    # Case 1: tiny batch -> fused XLA fallback path (kernel overhead not worth it).
    rx1 = jax.random.normal(k_x1, (8, n_ant), jnp.float32)
    out1 = jax.block_until_ready(dnn_detector_forward(rx1, w1, b1, w2, b2))
    ref1 = _reference(rx1, w1, b1, w2, b2)
    assert out1.shape == (8, n_states)
    assert jnp.allclose(out1, ref1, atol=1e-3)

    # Case 2: Pallas path with a small tile -> multi-tile grid + tail padding.
    batch2 = 300
    rx2 = jax.random.normal(k_x2, (batch2, n_ant), jnp.float32)
    out2 = jax.block_until_ready(
        dnn_detector_forward(rx2, w1, b1, w2, b2, block_b=128, min_pallas_batch=0))
    ref2 = _reference(rx2, w1, b1, w2, b2)
    assert out2.shape == (batch2, n_states)
    assert jnp.allclose(jnp.sum(out2, axis=-1), 1.0, atol=1e-3)
    assert jnp.allclose(out2, ref2, atol=1e-3)

    # Case 3: Pallas path with the default large tile (>= 2 grid tiles, ragged batch).
    batch3 = 2085
    rx3 = jax.random.normal(k_x3, (batch3, n_ant), jnp.float32)
    out3 = jax.block_until_ready(dnn_detector_forward(rx3, w1, b1, w2, b2))
    ref3 = _reference(rx3, w1, b1, w2, b2)
    assert out3.shape == (batch3, n_states)
    assert jnp.allclose(out3, ref3, atol=1e-3)

    print("KERNEL_OK")
</pallas_src>

<mosaic_0001>
module attributes {stable_mosaic.version = 11 : i64} {
  func.func @_mlp_softmax_kernel(%arg0: i32, %arg1: memref<128x4xf32, #tpu.memory_space<vmem>>, %arg2: memref<4x60xf32, #tpu.memory_space<vmem>>, %arg3: memref<1x60xf32, #tpu.memory_space<vmem>>, %arg4: memref<60x16xf32, #tpu.memory_space<vmem>>, %arg5: memref<1x16xf32, #tpu.memory_space<vmem>>, %arg6: memref<128x16xf32, #tpu.memory_space<vmem>>) attributes {dimension_semantics = [#tpu.dimension_semantics<parallel>], iteration_bounds = array<i64: 3>, scalar_prefetch = 0 : i64, scratch_operands = 0 : i64, tpu.core_type = #tpu.core_type<tc>, window_params = [{transform_indices = @transform_0, window_bounds = array<i64: 128, 4>}, {pipeline_mode = #tpu.pipeline_mode<synchronous>, transform_indices = @transform_1, window_bounds = array<i64: 4, 60>}, {pipeline_mode = #tpu.pipeline_mode<synchronous>, transform_indices = @transform_2, window_bounds = array<i64: 1, 60>}, {pipeline_mode = #tpu.pipeline_mode<synchronous>, transform_indices = @transform_3, window_bounds = array<i64: 60, 16>}, {pipeline_mode = #tpu.pipeline_mode<synchronous>, transform_indices = @transform_4, window_bounds = array<i64: 1, 16>}, {transform_indices = @transform_5, window_bounds = array<i64: 128, 16>}]} {
    %c0 = arith.constant 0 : index
    %c0_0 = arith.constant 0 : index
    %0 = vector.load %arg1[%c0, %c0_0] : memref<128x4xf32, #tpu.memory_space<vmem>>, vector<128x4xf32>
    %c0_1 = arith.constant 0 : index
    %c0_2 = arith.constant 0 : index
    %1 = vector.load %arg2[%c0_1, %c0_2] : memref<4x60xf32, #tpu.memory_space<vmem>>, vector<4x60xf32>
    %cst = arith.constant dense<0.000000e+00> : vector<128x60xf32>
    %2 = tpu.matmul %0, %1, %cst {dimension_numbers = #tpu.dot_dimension_numbers<[1], [0], [0], [1], [0, 0, 1, 1], [], []>} : vector<128x4xf32>, vector<4x60xf32>, vector<128x60xf32> -> vector<128x60xf32>
    %c0_3 = arith.constant 0 : index
    %c0_4 = arith.constant 0 : index
    %3 = vector.load %arg3[%c0_3, %c0_4] : memref<1x60xf32, #tpu.memory_space<vmem>>, vector<1x60xf32>
    %4 = vector.broadcast %3 : vector<1x60xf32> to vector<128x60xf32>
    %5 = arith.addf %2, %4 : vector<128x60xf32>
    %cst_5 = arith.constant 0.000000e+00 : f32
    %6 = vector.broadcast %cst_5 : f32 to vector<128x60xf32>
    %7 = arith.maximumf %5, %6 : vector<128x60xf32>
    %c0_6 = arith.constant 0 : index
    %c0_7 = arith.constant 0 : index
    %8 = vector.load %arg4[%c0_6, %c0_7] : memref<60x16xf32, #tpu.memory_space<vmem>>, vector<60x16xf32>
    %cst_8 = arith.constant dense<0.000000e+00> : vector<128x16xf32>
    %9 = tpu.matmul %7, %8, %cst_8 {dimension_numbers = #tpu.dot_dimension_numbers<[1], [0], [0], [1], [0, 0, 1, 1], [], []>} : vector<128x60xf32>, vector<60x16xf32>, vector<128x16xf32> -> vector<128x16xf32>
    %c0_9 = arith.constant 0 : index
    %c0_10 = arith.constant 0 : index
    %10 = vector.load %arg5[%c0_9, %c0_10] : memref<1x16xf32, #tpu.memory_space<vmem>>, vector<1x16xf32>
    %11 = vector.broadcast %10 : vector<1x16xf32> to vector<128x16xf32>
    %12 = arith.addf %9, %11 : vector<128x16xf32>
    %cst_11 = arith.constant dense<0xFF800000> : vector<128xf32>
    %13 = vector.multi_reduction <maximumf>, %12, %cst_11 [1] : vector<128x16xf32> to vector<128xf32>
    %14 = vector.shape_cast %13 : vector<128xf32> to vector<128x1xf32>
    %15 = vector.broadcast %14 : vector<128x1xf32> to vector<128x16xf32>
    %16 = arith.subf %12, %15 : vector<128x16xf32>
    %17 = math.exp %16 : vector<128x16xf32>
    %cst_12 = arith.constant dense<0.000000e+00> : vector<128xf32>
    %18 = vector.multi_reduction <add>, %17, %cst_12 [1] : vector<128x16xf32> to vector<128xf32>
    %19 = vector.shape_cast %18 : vector<128xf32> to vector<128x1xf32>
    %20 = vector.broadcast %19 : vector<128x1xf32> to vector<128x16xf32>
    %21 = arith.divf %17, %20 : vector<128x16xf32>
    %c0_13 = arith.constant 0 : index
    %c0_14 = arith.constant 0 : index
    %22 = vector.load %arg6[%c0_13, %c0_14] : memref<128x16xf32, #tpu.memory_space<vmem>>, vector<128x16xf32>
    tpu.vector_store %arg6[%c0_13, %c0_14], %21 {strides = array<i32>} : memref<128x16xf32, #tpu.memory_space<vmem>>, vector<128x16xf32>,
    return
  }
  func.func @transform_0(%arg0: i32) -> (i32, i32) {
    %c0_i32 = arith.constant 0 : i32
    %c0_i32_0 = arith.constant 0 : i32
    return %arg0, %c0_i32 : i32, i32
  }
  func.func @transform_1(%arg0: i32) -> (i32, i32) {
    %c0_i32 = arith.constant 0 : i32
    %c0_i32_0 = arith.constant 0 : i32
    %c0_i32_1 = arith.constant 0 : i32
    return %c0_i32, %c0_i32_0 : i32, i32
  }
  func.func @transform_2(%arg0: i32) -> (i32, i32) {
    %c0_i32 = arith.constant 0 : i32
    %c0_i32_0 = arith.constant 0 : i32
    %c0_i32_1 = arith.constant 0 : i32
    return %c0_i32, %c0_i32_0 : i32, i32
  }
  func.func @transform_3(%arg0: i32) -> (i32, i32) {
    %c0_i32 = arith.constant 0 : i32
    %c0_i32_0 = arith.constant 0 : i32
    %c0_i32_1 = arith.constant 0 : i32
    return %c0_i32, %c0_i32_0 : i32, i32
  }
  func.func @transform_4(%arg0: i32) -> (i32, i32) {
    %c0_i32 = arith.constant 0 : i32
    %c0_i32_0 = arith.constant 0 : i32
    %c0_i32_1 = arith.constant 0 : i32
    return %c0_i32, %c0_i32_0 : i32, i32
  }
  func.func @transform_5(%arg0: i32) -> (i32, i32) {
    %c0_i32 = arith.constant 0 : i32
    %c0_i32_0 = arith.constant 0 : i32
    return %arg0, %c0_i32 : i32, i32
  }
}

</mosaic_0001>

<bundles_post_ra>
// kernel: tpu_custom_call.1
= control target key start
LH: loop header
LB: loop body
LE: loop exit
PB: predicated region body
PF: predicated region fallthrough
CT: control target
= control target key end

     0   :  { %s1143_s18 = smov 0   ;;  %s1485_s0 = inlined_call_operand.vmem [shape: f32[384,4], index: 0, kind: input, shape index: {}]   ;;  %s1486_s1 = inlined_call_operand.vmem [shape: f32[4,60], index: 1, kind: input, shape index: {}]   ;;  %s1487_s2 = inlined_call_operand.vmem [shape: f32[1,60], index: 2, kind: input, shape index: {}]   ;;  %s1488_s3 = inlined_call_operand.vmem [shape: f32[60,16], index: 3, kind: input, shape index: {}]   ;;  %s1489_s4 = inlined_call_operand.vmem [shape: f32[1,16], index: 4, kind: input, shape index: {}]   ;;  %s1490_s5 = inlined_call_operand.vmem [shape: f32[384,16], index: 5, kind: output, shape index: {}]  }
   0x1 LB: > { %s969_s19 = sadd.s32 4294967295, %s1111_s18   ;;  %p973_p0 = scmp.ge.s32.totalorder %s1111_s18, 1  ;;  %s1111_s18 = sphi %s1143_s18, %s15_s18  }
   0x2   : > { %p188_p1 = scmp.lt.s32.totalorder %s1111_s18, 4 }
   0x4   : > { %p189_p2 = pnand %p973_p0, %p188_p1 }
   0x5   : > { %s974_s22 = sshll.u32 (!%p189_p2), %s969_s19, 4 }
   0x6   : > { %192 = sbr.rel (%p189_p2) target bundleno = 656 (0x290), region = 40  ;;  %p217_p3 = scmp.lt.s32.totalorder (!%p189_p2), %s974_s22, 47 }
   0xb   : > { %v244_v0 = vld [vmem:[%s1486_s1] sm:$0xf]  ;;  %vm298_vm0 = vcmask 1043456   ;;  %s1492_s22 = smov (!%p217_p3, %s974_s22), 47  ;;  %vm249_vm1 = vcmask 31744   ;;  %v389_v10 = vld [vmem:[%s1488_s3 + $0x30] sm:$0xff] }
   0xc   : > { %978 = vmatpush.msk.msra.mxu0 %vm298_vm0, %v244_v0  ;;  %1014 = vmatpush.msk.msra.mxu3 %vm298_vm0, %v244_v0  ;;  %s975_s23 = sshll.u32 %s1492_s22, 3  ;;  %v390_v9 = vld [vmem:[%s1488_s3 + $0x38] sm:$0xf]  ;;  %v388_v11 = vld [vmem:[%s1488_s3 + $0x28] sm:$0xff]  ;;  %v387_v13 = vld [vmem:[%s1488_s3 + $0x20] sm:$0xff]  ;;  %vm395_vm2 = vcmask 490496  }
   0xd   : > { %s1164_s26 = scalar_lea.vmem %s1485_s0, %s975_s23  ;;  %995 = vmatpush.msk.msra.mxu1 %vm298_vm0, %v390_v9  ;;  %1015 = vmatpush.msk.msra.mxu2 %vm298_vm0, %v390_v9  ;;  %v386_v15 = vld [vmem:[%s1488_s3 + $0x18] sm:$0xff]  ;;  %v385_v22 = vld [vmem:[%s1488_s3 + $0x10] sm:$0xff]  ;;  %v384_v23 = vld [vmem:[%s1488_s3 + $0x8] sm:$0xff]  ;;  %vm512_vm3 = vcmask 130048   ;;  %s1432_s27 = scalar_lea.vmem %s1490_s5, %s975_s23 }
   0xe   : > { %v228_v1 = vld [vmem:[%s1164_s26] sm:$0xff]  ;;  %v229_v2 = vld [vmem:[%s1164_s26 + $0x8] sm:$0xff]  ;;  %v230_v3 = vld [vmem:[%s1164_s26 + $0x10] sm:$0xff]  ;;  %1016 = vmatpush.msk.msrb.mxu3 %vm298_vm0, %v390_v9 }
   0xf   : > { %979 = vmatmul.msk.f32.vlgmr.msra.gmra.mxu0 %vm249_vm1, %v228_v1  ;;  %v237_v4 = vld [vmem:[%s1164_s26 + $0x48] sm:$0xff]  ;;  %v231_v5 = vld [vmem:[%s1164_s26 + $0x18] sm:$0xff]  ;;  %v238_v6 = vld [vmem:[%s1164_s26 + $0x50] sm:$0xff]  ;;  %456 = vmatpush.msra.mxu1 %v389_v10 }
  0x10   : > { %988 = vmatmul.msk.f32.vlgmr.msra.gmra.mxu3 %vm249_vm1, %v237_v4  ;;  %v232_v7 = vld [vmem:[%s1164_s26 + $0x20] sm:$0xff]  ;;  %v239_v8 = vld [vmem:[%s1164_s26 + $0x58] sm:$0xff]  ;;  %1017 = vmatpush.msra.mxu2 %v389_v10  ;;  %v233_v12 = vld [vmem:[%s1164_s26 + $0x28] sm:$0xff] }
  0x11   : > { %1018 = vmatpush.msrb.mxu3 %v389_v10  ;;  %v240_v14 = vld [vmem:[%s1164_s26 + $0x60] sm:$0xff]  ;;  %457 = vmatpush.msra.mxu1 %v388_v11  ;;  %v234_v16 = vld [vmem:[%s1164_s26 + $0x30] sm:$0xff]  ;;  %v241_v17 = vld [vmem:[%s1164_s26 + $0x68] sm:$0xff] }
  0x12   : > { %1019 = vmatpush.msra.mxu2 %v388_v11  ;;  %v235_v18 = vld [vmem:[%s1164_s26 + $0x38] sm:$0xff]  ;;  %v242_v19 = vld [vmem:[%s1164_s26 + $0x70] sm:$0xff]  ;;  %v236_v20 = vld [vmem:[%s1164_s26 + $0x40] sm:$0xff] }
  0x13   : > { %1020 = vmatpush.msrb.mxu3 %v388_v11  ;;  %458 = vmatpush.msra.mxu1 %v387_v13  ;;  %v243_v21 = vld [vmem:[%s1164_s26 + $0x78] sm:$0xff]  ;;  %v383_v24 = vld [vmem:[%s1488_s3] sm:$0xff] }
  0x14   : > { %1021 = vmatpush.msra.mxu2 %v387_v13  ;;  %v1228_v25 = vld [vmem:[%s1487_s2] ss:$0 sm:$0xff] }
  0x15   : > { %459 = vmatpush.msra.mxu1 %v386_v15  ;;  %1022 = vmatpush.msrb.mxu3 %v387_v13  ;;  %v1265_v10 = vld [vmem:[%s1489_s4] ss:$0 sm:$0xff] }
  0x16   : > { %1023 = vmatpush.msra.mxu2 %v386_v15 }
  0x17   : > { %980 = vmatmul.msk.f32.gmra.mxu0 %vm249_vm1, %v229_v2  ;;  %1024 = vmatpush.msrb.mxu3 %v386_v15 }
  0x18   : > { %989 = vmatmul.msk.f32.gmra.mxu3 %vm249_vm1, %v238_v6  ;;  %460 = vmatpush.msra.mxu1 %v385_v22 }
  0x19   : > { %1025 = vmatpush.msra.mxu2 %v385_v22  ;;  %1026 = vmatpush.msrb.mxu3 %v385_v22 }
  0x1a   : > { %461 = vmatpush.msra.mxu1 %v384_v23 }
  0x1b   : > { %1027 = vmatpush.msra.mxu2 %v384_v23  ;;  %1028 = vmatpush.msrb.mxu3 %v384_v23 }
  0x1c   : > { %462 = vmatpush.msra.mxu1 %v383_v24 }
  0x1d   : > { %1029 = vmatpush.msra.mxu2 %v383_v24  ;;  %1030 = vmatpush.msrb.mxu3 %v383_v24 }
  0x1f   : > { %981 = vmatmul.msk.f32.gmra.mxu0 %vm249_vm1, %v230_v3 }
  0x20   : > { %990 = vmatmul.msk.f32.gmra.mxu3 %vm249_vm1, %v239_v8 }
  0x27   : > { %982 = vmatmul.msk.f32.gmra.mxu0 %vm249_vm1, %v231_v5 }
  0x28   : > { %991 = vmatmul.msk.f32.gmra.mxu3 %vm249_vm1, %v240_v14 }
  0x2f   : > { %983 = vmatmul.msk.f32.gmra.mxu0 %vm249_vm1, %v232_v7 }
  0x30   : > { %992 = vmatmul.msk.f32.gmra.mxu3 %vm249_vm1, %v241_v17 }
  0x37   : > { %984 = vmatmul.msk.f32.gmra.mxu0 %vm249_vm1, %v233_v12 }
  0x38   : > { %993 = vmatmul.msk.f32.gmra.mxu3 %vm249_vm1, %v242_v19 }
  0x3f   : > { %985 = vmatmul.msk.f32.gmra.mxu0 %vm249_vm1, %v234_v16 }
  0x40   : > { %994 = vmatmul.msk.f32.gmra.mxu3 %vm249_vm1, %v243_v21 }
  0x47   : > { %986 = vmatmul.msk.f32.gmra.mxu0 %vm249_vm1, %v235_v18 }
  0x4f   : > { %987 = vmatmul.msk.f32.gmra.mxu0 %vm249_vm1, %v236_v20 }
  0x8c   : > { %v319_v26 = vpop.f32.mrf.mxu0 }
  0x8d   : > { %v320_v27 = vadd.f32 %v1228_v25, %v319_v26 }
  0x8f   : > { %v367_v28 = vmax.f32 %v320_v27, 0.0 }
  0x91   : > { %996 = vmatmul.msk.f32.vlgmr.msra.gmra.mxu1 %vm395_vm2, %v367_v28 }
  0x93   : > { %v346_v36 = vpop.f32.mrf.mxu3 }
  0x94   : > { %v322_v29 = vpop.f32.mrf.mxu0  ;;  %v347_v59 = vadd.f32 %v1228_v25, %v346_v36 }
  0x95   : > { %v323_v30 = vadd.f32 %v1228_v25, %v322_v29 }
  0x96   : > { %v376_v62 = vmax.f32 %v347_v59, 0.0 }
  0x97   : > { %v368_v31 = vmax.f32 %v323_v30, 0.0 }
  0x99   : > { %997 = vmatmul.msk.f32.gmra.mxu1 %vm395_vm2, %v368_v31 }
  0x9b   : > { %v349_v40 = vpop.f32.mrf.mxu3 }
  0x9c   : > { %v325_v32 = vpop.f32.mrf.mxu0  ;;  %v350_v0 = vadd.f32 %v1228_v25, %v349_v40 }
  0x9d   : > { %v326_v33 = vadd.f32 %v1228_v25, %v325_v32 }
  0x9e   : > { %v377_v1 = vmax.f32 %v350_v0, 0.0 }
  0x9f   : > { %v369_v34 = vmax.f32 %v326_v33, 0.0 }
  0xa1   : > { %998 = vmatmul.msk.f32.gmra.mxu1 %vm395_vm2, %v369_v34 }
  0xa3   : > { %v352_v44 = vpop.f32.mrf.mxu3 }
  0xa4   : > { %v328_v35 = vpop.f32.mrf.mxu0  ;;  %v353_v2 = vadd.f32 %v1228_v25, %v352_v44 }
  0xa5   : > { %v329_v37 = vadd.f32 %v1228_v25, %v328_v35 }
  0xa6   : > { %v378_v3 = vmax.f32 %v353_v2, 0.0 }
  0xa7   : > { %v370_v38 = vmax.f32 %v329_v37, 0.0 }
  0xa9   : > { %999 = vmatmul.msk.f32.gmra.mxu1 %vm395_vm2, %v370_v38 }
  0xab   : > { %v355_v48 = vpop.f32.mrf.mxu3 }
  0xac   : > { %v331_v39 = vpop.f32.mrf.mxu0  ;;  %v356_v4 = vadd.f32 %v1228_v25, %v355_v48 }
  0xad   : > { %v332_v41 = vadd.f32 %v1228_v25, %v331_v39 }
  0xae   : > { %v379_v5 = vmax.f32 %v356_v4, 0.0 }
  0xaf   : > { %v371_v42 = vmax.f32 %v332_v41, 0.0 }
  0xb1   : > { %1000 = vmatmul.msk.f32.gmra.mxu1 %vm395_vm2, %v371_v42 }
  0xb3   : > { %v358_v52 = vpop.f32.mrf.mxu3 }
  0xb4   : > { %v334_v43 = vpop.f32.mrf.mxu0  ;;  %v359_v6 = vadd.f32 %v1228_v25, %v358_v52 }
  0xb5   : > { %v335_v45 = vadd.f32 %v1228_v25, %v334_v43 }
  0xb6   : > { %v380_v7 = vmax.f32 %v359_v6, 0.0 }
  0xb7   : > { %v372_v46 = vmax.f32 %v335_v45, 0.0 }
  0xb9   : > { %1001 = vmatmul.msk.f32.gmra.mxu1 %vm395_vm2, %v372_v46 }
  0xbb   : > { %v361_v56 = vpop.f32.mrf.mxu3 }
  0xbc   : > { %v337_v47 = vpop.f32.mrf.mxu0  ;;  %v362_v8 = vadd.f32 %v1228_v25, %v361_v56 }
  0xbd   : > { %v338_v49 = vadd.f32 %v1228_v25, %v337_v47 }
  0xbe   : > { %v381_v9 = vmax.f32 %v362_v8, 0.0 }
  0xbf   : > { %v373_v50 = vmax.f32 %v338_v49, 0.0 }
  0xc1   : > { %1002 = vmatmul.msk.f32.gmra.mxu1 %vm395_vm2, %v373_v50 }
  0xc3   : > { %v364_v60 = vpop.f32.mrf.mxu3 }
  0xc4   : > { %v340_v51 = vpop.f32.mrf.mxu0  ;;  %v365_v61 = vadd.f32 %v1228_v25, %v364_v60 }
  0xc5   : > { %v341_v53 = vadd.f32 %v1228_v25, %v340_v51 }
  0xc6   : > { %v382_v63 = vmax.f32 %v365_v61, 0.0 }
  0xc7   : > { %v374_v54 = vmax.f32 %v341_v53, 0.0 }
  0xc8   : > { %1011 = vmatmul.msk.f32.vlgmr.msrb.gmra.mxu3 %vm395_vm2, %v382_v63 }
  0xc9   : > { %1003 = vmatmul.msk.f32.vlgmr.msra.gmra.mxu2 %vm395_vm2, %v374_v54 }
  0xcc   : > { %v343_v55 = vpop.f32.mrf.mxu0 }
  0xcd   : > { %v344_v57 = vadd.f32 %v1228_v25, %v343_v55 }
  0xcf   : > { %v375_v58 = vmax.f32 %v344_v57, 0.0 }
  0xd1   : > { %1004 = vmatmul.msk.f32.gmra.mxu2 %vm395_vm2, %v375_v58 }
  0xd9   : > { %1005 = vmatmul.msk.f32.gmra.mxu2 %vm395_vm2, %v376_v62 }
  0xe1   : > { %1006 = vmatmul.msk.f32.gmra.mxu2 %vm395_vm2, %v377_v1 }
  0xe9   : > { %1007 = vmatmul.msk.f32.gmra.mxu2 %vm395_vm2, %v378_v3 }
  0xf1   : > { %1008 = vmatmul.msk.f32.gmra.mxu2 %vm395_vm2, %v379_v5 }
  0xf9   : > { %1009 = vmatmul.msk.f32.gmra.mxu2 %vm395_vm2, %v380_v7 }
 0x101   : > { %1010 = vmatmul.msk.f32.gmra.mxu2 %vm395_vm2, %v381_v9 }
 0x10e   : > { %v464_v11 = vpop.f32.mrf.mxu1 }
 0x10f   : > { %v1268_v12 = vadd.f32 %v1265_v10, %v464_v11 }
 0x111   : > { %v513_v13 = vsel %vm512_vm3, %v1268_v12, -inf }
 0x112   : > { %514 = vmax.xlane.f32.xlu0 %v513_v13 }
 0x116   : > { %v467_v14 = vpop.f32.mrf.mxu1 }
 0x117   : > { %v1273_v15 = vadd.f32 %v1265_v10, %v467_v14 }
 0x119   : > { %v516_v16 = vsel %vm512_vm3, %v1273_v15, -inf }
 0x11a   : > { %517 = vmax.xlane.f32.xlu0 %v516_v16 }
 0x11e   : > { %v470_v17 = vpop.f32.mrf.mxu1 }
 0x11f   : > { %v1278_v18 = vadd.f32 %v1265_v10, %v470_v17 }
 0x121   : > { %v519_v19 = vsel %vm512_vm3, %v1278_v18, -inf }
 0x122   : > { %520 = vmax.xlane.f32.xlu1 %v519_v19 }
 0x126   : > { %v473_v20 = vpop.f32.mrf.mxu1 }
 0x127   : > { %v1283_v21 = vadd.f32 %v1265_v10, %v473_v20 }
 0x129   : > { %v522_v22 = vsel %vm512_vm3, %v1283_v21, -inf }
 0x12a   : > { %523 = vmax.xlane.f32.xlu1 %v522_v22 }
 0x12e   : > { %v476_v23 = vpop.f32.mrf.mxu1 }
 0x12f   : > { %v1288_v24 = vadd.f32 %v1265_v10, %v476_v23 }
 0x131   : > { %v525_v25 = vsel %vm512_vm3, %v1288_v24, -inf }
 0x132   : > { %526 = vmax.xlane.f32.xlu2 %v525_v25 }
 0x136   : > { %v479_v26 = vpop.f32.mrf.mxu1 }
 0x137   : > { %v1293_v27 = vadd.f32 %v1265_v10, %v479_v26 }
 0x139   : > { %v528_v28 = vsel %vm512_vm3, %v1293_v27, -inf }
 0x13a   : > { %529 = vmax.xlane.f32.xlu2 %v528_v28 }
 0x13e   : > { %v482_v29 = vpop.f32.mrf.mxu1 }
 0x13f   : > { %v1298_v30 = vadd.f32 %v1265_v10, %v482_v29 }
 0x141   : > { %v531_v31 = vsel %vm512_vm3, %v1298_v30, -inf }
 0x142   : > { %532 = vmax.xlane.f32.xlu0 %v531_v31 }
 0x14b   : > { %v509_v49 = vpop.f32.mrf.mxu3 }
 0x14c   : > { %v485_v32 = vpop.f32.mrf.mxu2  ;;  %v1333_v51 = vadd.f32 %v1265_v10, %v509_v49 }
 0x14d   : > { %v1303_v33 = vadd.f32 %v1265_v10, %v485_v32 }
 0x14e   : > { %v558_v54 = vsel %vm512_vm3, %v1333_v51, -inf }
 0x14f   : > { %v534_v34 = vsel %vm512_vm3, %v1303_v33, -inf }
 0x150   : > { %535 = vmax.xlane.f32.xlu1 %v534_v34 }
 0x154   : > { %v488_v35 = vpop.f32.mrf.mxu2 }
 0x155   : > { %v1308_v36 = vadd.f32 %v1265_v10, %v488_v35 }
 0x157   : > { %v537_v37 = vsel %vm512_vm3, %v1308_v36, -inf }
 0x158   : > { %538 = vmax.xlane.f32.xlu2 %v537_v37 }
 0x15c   : > { %v491_v38 = vpop.f32.mrf.mxu2 }
 0x15d   : > { %v1313_v39 = vadd.f32 %v1265_v10, %v491_v38 }
 0x15f   : > { %v540_v40 = vsel %vm512_vm3, %v1313_v39, -inf }
 0x160   : > { %541 = vmax.xlane.f32.xlu0 %v540_v40 }
 0x164   : > { %v494_v41 = vpop.f32.mrf.mxu2 }
 0x165   : > { %v1318_v42 = vadd.f32 %v1265_v10, %v494_v41 }
 0x167   : > { %v543_v43 = vsel %vm512_vm3, %v1318_v42, -inf }
 0x168   : > { %544 = vmax.xlane.f32.xlu1 %v543_v43 }
 0x16c   : > { %v497_v44 = vpop.f32.mrf.mxu2 }
 0x16d   : > { %v1323_v45 = vadd.f32 %v1265_v10, %v497_v44 }
 0x16f   : > { %v546_v46 = vsel %vm512_vm3, %v1323_v45, -inf }
 0x170   : > { %547 = vmax.xlane.f32.xlu2 %v546_v46 }
 0x174   : > { %v500_v47 = vpop.f32.mrf.mxu2 }
 0x175   : > { %v1328_v48 = vadd.f32 %v1265_v10, %v500_v47 }
 0x177   : > { %v549_v50 = vsel %vm512_vm3, %v1328_v48, -inf }
 0x178   : > { %550 = vmax.xlane.f32.xlu0 %v549_v50 }
 0x17c   : > { %v503_v52 = vpop.f32.mrf.mxu2 }
 0x17d   : > { %v1336_v53 = vadd.f32 %v1265_v10, %v503_v52 }
 0x17f   : > { %v552_v55 = vsel %vm512_vm3, %v1336_v53, -inf }
 0x180   : > { %553 = vmax.xlane.f32.xlu1 %v552_v55  ;;  %559 = vmax.xlane.f32.xlu0 %v558_v54 }
 0x184   : > { %v506_v56 = vpop.f32.mrf.mxu2 }
 0x185   : > { %v1343_v57 = vadd.f32 %v1265_v10, %v506_v56  ;;  %v515_v58 = vpop.xlane.xlu0 %514 }
 0x186   : > { %v561_v59 = vsub.f32 %v1268_v12, %v515_v58 }
 0x187   : > { %v555_v60 = vsel %vm512_vm3, %v1343_v57, -inf }
 0x188   : > { %v577_v61 = vmul.f32 1.442695, %v561_v59  ;;  %556 = vmax.xlane.f32.xlu2 %v555_v60 }
 0x18a   : > { %1041 = vpow2.f32 %v577_v61 }
 0x18d   : > { %v518_v62 = vpop.xlane.xlu0 %517 }
 0x18e   : > { %v562_v63 = vsub.f32 %v1273_v15, %v518_v62 }
 0x190   : > { %v1349_v0 = vpop.eup %1041  ;;  %v579_v1 = vmul.f32 1.442695, %v562_v63 }
 0x191   : > { %v609_v2 = vsel %vm512_vm3, %v1349_v0, 0.0 }
 0x192   : > { %1043 = vpow2.f32 %v579_v1  ;;  %610 = vadd.xlane.f32.xlu1 %v609_v2 }
 0x195   : > { %v521_v3 = vpop.xlane.xlu1 %520 }
 0x196   : > { %v563_v4 = vsub.f32 %v1278_v18, %v521_v3 }
 0x198   : > { %v1354_v5 = vpop.eup %1043  ;;  %v581_v6 = vmul.f32 1.442695, %v563_v4 }
 0x199   : > { %v612_v7 = vsel %vm512_vm3, %v1354_v5, 0.0 }
 0x19a   : > { %1045 = vpow2.f32 %v581_v6  ;;  %613 = vadd.xlane.f32.xlu2 %v612_v7 }
 0x19d   : > { %v524_v8 = vpop.xlane.xlu1 %523 }
 0x19e   : > { %v564_v9 = vsub.f32 %v1283_v21, %v524_v8 }
 0x1a0   : > { %v1359_v10 = vpop.eup %1045  ;;  %v583_v11 = vmul.f32 1.442695, %v564_v9 }
 0x1a1   : > { %v615_v12 = vsel %vm512_vm3, %v1359_v10, 0.0 }
 0x1a2   : > { %1047 = vpow2.f32 %v583_v11  ;;  %616 = vadd.xlane.f32.xlu0 %v615_v12 }
 0x1a5   : > { %v527_v13 = vpop.xlane.xlu2 %526 }
 0x1a6   : > { %v565_v14 = vsub.f32 %v1288_v24, %v527_v13 }
 0x1a8   : > { %v1364_v15 = vpop.eup %1047  ;;  %v585_v16 = vmul.f32 1.442695, %v565_v14 }
 0x1a9   : > { %v618_v17 = vsel %vm512_vm3, %v1364_v15, 0.0 }
 0x1aa   : > { %1049 = vpow2.f32 %v585_v16  ;;  %619 = vadd.xlane.f32.xlu1 %v618_v17 }
 0x1ad   : > { %v530_v18 = vpop.xlane.xlu2 %529 }
 0x1ae   : > { %v566_v19 = vsub.f32 %v1293_v27, %v530_v18 }
 0x1b0   : > { %v1369_v20 = vpop.eup %1049  ;;  %v587_v21 = vmul.f32 1.442695, %v566_v19 }
 0x1b1   : > { %v621_v22 = vsel %vm512_vm3, %v1369_v20, 0.0 }
 0x1b2   : > { %1051 = vpow2.f32 %v587_v21  ;;  %622 = vadd.xlane.f32.xlu2 %v621_v22 }
 0x1b5   : > { %v533_v23 = vpop.xlane.xlu0 %532 }
 0x1b6   : > { %v567_v24 = vsub.f32 %v1298_v30, %v533_v23 }
 0x1b8   : > { %v1374_v25 = vpop.eup %1051  ;;  %v589_v26 = vmul.f32 1.442695, %v567_v24 }
 0x1b9   : > { %v624_v28 = vsel %vm512_vm3, %v1374_v25, 0.0 }
 0x1ba   : > { %1053 = vpow2.f32 %v589_v26  ;;  %625 = vadd.xlane.f32.xlu0 %v624_v28 }
 0x1c0   : > { %v1378_v27 = vpop.eup %1053 }
 0x1c1   : > { %v627_v29 = vsel %vm512_vm3, %v1378_v27, 0.0 }
 0x1c2   : > { %628 = vadd.xlane.f32.xlu1 %v627_v29 }
 0x1c3   : > { %v536_v31 = vpop.xlane.xlu1 %535 }
 0x1c4   : > { %v568_v32 = vsub.f32 %v1303_v33, %v536_v31 }
 0x1c6   : > { %v591_v34 = vmul.f32 1.442695, %v568_v32 }
 0x1c8   : > { %1055 = vpow2.f32 %v591_v34 }
 0x1cb   : > { %v539_v30 = vpop.xlane.xlu2 %538 }
 0x1cc   : > { %v569_v35 = vsub.f32 %v1308_v36, %v539_v30 }
 0x1ce   : > { %v1384_v37 = vpop.eup %1055  ;;  %v593_v38 = vmul.f32 1.442695, %v569_v35 }
 0x1cf   : > { %v630_v40 = vsel %vm512_vm3, %v1384_v37, 0.0 }
 0x1d0   : > { %1057 = vpow2.f32 %v593_v38  ;;  %631 = vadd.xlane.f32.xlu2 %v630_v40 }
 0x1d3   : > { %v542_v41 = vpop.xlane.xlu0 %541 }
 0x1d4   : > { %v570_v43 = vsub.f32 %v1313_v39, %v542_v41 }
 0x1d6   : > { %v1389_v44 = vpop.eup %1057  ;;  %v595_v46 = vmul.f32 1.442695, %v570_v43 }
 0x1d7   : > { %v633_v33 = vsel %vm512_vm3, %v1389_v44, 0.0 }
 0x1d8   : > { %1059 = vpow2.f32 %v595_v46  ;;  %634 = vadd.xlane.f32.xlu0 %v633_v33 }
 0x1db   : > { %v545_v36 = vpop.xlane.xlu1 %544 }
 0x1dc   : > { %v571_v47 = vsub.f32 %v1318_v42, %v545_v36 }
 0x1de   : > { %v1394_v49 = vpop.eup %1059  ;;  %v597_v50 = vmul.f32 1.442695, %v571_v47 }
 0x1df   : > { %v636_v52 = vsel %vm512_vm3, %v1394_v49, 0.0 }
 0x1e0   : > { %1061 = vpow2.f32 %v597_v50  ;;  %637 = vadd.xlane.f32.xlu1 %v636_v52 }
 0x1e3   : > { %v548_v39 = vpop.xlane.xlu2 %547 }
 0x1e4   : > { %v572_v54 = vsub.f32 %v1323_v45, %v548_v39 }
 0x1e6   : > { %v1399_v55 = vpop.eup %1061  ;;  %v599_v56 = vmul.f32 1.442695, %v572_v54 }
 0x1e7   : > { %v639_v58 = vsel %vm512_vm3, %v1399_v55, 0.0 }
 0x1e8   : > { %1063 = vpow2.f32 %v599_v56  ;;  %640 = vadd.xlane.f32.xlu2 %v639_v58 }
 0x1eb   : > { %v551_v42 = vpop.xlane.xlu0 %550 }
 0x1ec   : > { %v573_v59 = vsub.f32 %v1328_v48, %v551_v42 }
 0x1ee   : > { %v1404_v60 = vpop.eup %1063  ;;  %v601_v61 = vmul.f32 1.442695, %v573_v59 }
 0x1ef   : > { %v642_v62 = vsel %vm512_vm3, %v1404_v60, 0.0 }
 0x1f0   : > { %1065 = vpow2.f32 %v601_v61  ;;  %643 = vadd.xlane.f32.xlu0 %v642_v62 }
 0x1f3   : > { %v554_v45 = vpop.xlane.xlu1 %553  ;;  %v560_v63 = vpop.xlane.xlu0 %559 }
 0x1f4   : > { %v574_v1 = vsub.f32 %v1336_v53, %v554_v45  ;;  %v576_v2 = vsub.f32 %v1333_v51, %v560_v63 }
 0x1f6   : > { %v1410_v3 = vpop.eup %1065  ;;  %v603_v4 = vmul.f32 1.442695, %v574_v1  ;;  %v607_v6 = vmul.f32 1.442695, %v576_v2 }
 0x1f7   : > { %v645_v48 = vsel %vm512_vm3, %v1410_v3, 0.0 }
 0x1f8   : > { %1067 = vpow2.f32 %v603_v4  ;;  %646 = vadd.xlane.f32.xlu1 %v645_v48 }
 0x1f9   : > { %1069 = vpow2.f32 %v607_v6 }
 0x1fb   : > { %v557_v7 = vpop.xlane.xlu2 %556 }
 0x1fc   : > { %v575_v8 = vsub.f32 %v1343_v57, %v557_v7 }
 0x1fe   : > { %v1415_v9 = vpop.eup %1067  ;;  %v605_v11 = vmul.f32 1.442695, %v575_v8 }
 0x1ff   : > { %v1417_v12 = vpop.eup %1069  ;;  %v648_v51 = vsel %vm512_vm3, %v1415_v9, 0.0 }
 0x200   : > { %1071 = vpow2.f32 %v605_v11  ;;  %649 = vadd.xlane.f32.xlu2 %v648_v51  ;;  %v654_v53 = vsel %vm512_vm3, %v1417_v12, 0.0 }
 0x201   : > { %655 = vadd.xlane.f32.xlu1 %v654_v53 }
 0x205   : > { %v611_v13 = vpop.xlane.xlu1 %610 }
 0x206   : > { %v1423_v14 = vpop.eup %1071  ;;  %1073 = vrcp.f32 %v611_v13  ;;  %v668_v21 = vand.u32 2147483648, %v611_v13  ;;  %v666_v23 = vand.u32 2147483647, %v611_v13  ;;  %vm662_vm5 = vweird.f32 %v611_v13 }
 0x207   : > { %v651_v57 = vsel %vm512_vm3, %v1423_v14, 0.0 }
 0x208   : > { %652 = vadd.xlane.f32.xlu0 %v651_v57  ;;  %v669_v28 = vor.u32 1.1754944e-38, %v668_v21  ;;  %vm667_vm7 = vcmp.eq.f32.partialorder %v666_v23, 8.507059e+37 }
 0x20c   : > { %v1074_v16 = vpop.eup %1073 }
 0x20d   : > { %v658_v17 = vmul.f32 %v1074_v16, %v611_v13  ;;  %v614_v18 = vpop.xlane.xlu2 %613  ;;  %vm663_vm4 = vweird.f32 %v1074_v16 }
 0x20e   : > { %1075 = vrcp.f32 %v614_v18  ;;  %vm664_vm6 = vmor %vm662_vm5, %vm663_vm4  ;;  %v683_v38 = vand.u32 2147483648, %v614_v18  ;;  %v681_v41 = vand.u32 2147483647, %v614_v18  ;;  %vm677_vm9 = vweird.f32 %v614_v18 }
 0x20f   : > { %v659_v19 = vsub.f32 1.0, %v658_v17 }
 0x210   : > { %v684_v33 = vor.u32 1.1754944e-38, %v683_v38  ;;  %vm682_vm11 = vcmp.eq.f32.partialorder %v681_v41, 8.507059e+37 }
 0x211   : > { %v660_v22 = vmul.f32 %v1074_v16, %v659_v19 }
 0x213   : > { %v661_v24 = vadd.f32 %v1074_v16, %v660_v22 }
 0x214   : > { %v1076_v26 = vpop.eup %1075 }
 0x215   : > { %v665_v29 = vsel %vm664_vm6, %v1074_v16, %v661_v24  ;;  %v673_v31 = vmul.f32 %v1076_v26, %v614_v18  ;;  %v617_v32 = vpop.xlane.xlu0 %616  ;;  %vm678_vm8 = vweird.f32 %v1076_v26 }
 0x216   : > { %v670_v34 = vsel %vm667_vm7, %v669_v28, %v665_v29  ;;  %1077 = vrcp.f32 %v617_v32  ;;  %vm679_vm10 = vmor %vm677_vm9, %vm678_vm8  ;;  %v698_v54 = vand.u32 2147483648, %v617_v32  ;;  %v696_v58 = vand.u32 2147483647, %v617_v32 }
 0x217   : > { %v671_v30 = vmul.f32 %v1349_v0, %v670_v34  ;;  %v674_v35 = vsub.f32 1.0, %v673_v31  ;;  %vm692_vm13 = vweird.f32 %v617_v32 }
 0x218   : > { %v699_v61 = vor.u32 1.1754944e-38, %v698_v54  ;;  %vm697_vm15 = vcmp.eq.f32.partialorder %v696_v58, 8.507059e+37 }
 0x219   : > { %897 = vst.msk [vmem:[%s1432_s27] sm:$0xff] %vm512_vm3, %v671_v30  ;;  %v675_v40 = vmul.f32 %v1076_v26, %v674_v35 }
 0x21b   : > { %v676_v43 = vadd.f32 %v1076_v26, %v675_v40 }
 0x21c   : > { %v1078_v46 = vpop.eup %1077 }
 0x21d   : > { %v680_v36 = vsel %vm679_vm10, %v1076_v26, %v676_v43  ;;  %v688_v47 = vmul.f32 %v1078_v46, %v617_v32  ;;  %v620_v50 = vpop.xlane.xlu1 %619  ;;  %vm693_vm12 = vweird.f32 %v1078_v46 }
 0x21e   : > { %v685_v52 = vsel %vm682_vm11, %v684_v33, %v680_v36  ;;  %1079 = vrcp.f32 %v620_v50  ;;  %vm694_vm14 = vmor %vm692_vm13, %vm693_vm12  ;;  %v713_v4 = vand.u32 2147483648, %v620_v50  ;;  %v711_v48 = vand.u32 2147483647, %v620_v50 }
 0x21f   : > { %v686_v0 = vmul.f32 %v1354_v5, %v685_v52  ;;  %v689_v39 = vsub.f32 1.0, %v688_v47  ;;  %vm707_vm1 = vweird.f32 %v620_v50 }
 0x220   : > { %v714_v11 = vor.u32 1.1754944e-38, %v713_v4  ;;  %vm712_vm4 = vcmp.eq.f32.partialorder %v711_v48, 8.507059e+37 }
 0x221   : > { %898 = vst.msk [vmem:[%s1432_s27 + $0x8] sm:$0xff] %vm512_vm3, %v686_v0  ;;  %v690_v56 = vmul.f32 %v1078_v46, %v689_v39 }
 0x223   : > { %v691_v42 = vadd.f32 %v1078_v46, %v690_v56 }
 0x224   : > { %v1080_v59 = vpop.eup %1079 }
 0x225   : > { %v695_v62 = vsel %vm694_vm14, %v1078_v46, %v691_v42  ;;  %v703_v45 = vmul.f32 %v1080_v59, %v620_v50  ;;  %v623_v63 = vpop.xlane.xlu2 %622  ;;  %vm708_vm0 = vweird.f32 %v1080_v59 }
 0x226   : > { %v700_v1 = vsel %vm697_vm15, %v699_v61, %v695_v62  ;;  %1081 = vrcp.f32 %v623_v63  ;;  %vm709_vm2 = vmor %vm707_vm1, %vm708_vm0  ;;  %v728_v17 = vand.u32 2147483648, %v623_v63  ;;  %v726_v19 = vand.u32 2147483647, %v623_v63 }
 0x227   : > { %v701_v5 = vmul.f32 %v1359_v10, %v700_v1  ;;  %v704_v2 = vsub.f32 1.0, %v703_v45  ;;  %vm722_vm6 = vweird.f32 %v623_v63 }
 0x228   : > { %v729_v23 = vor.u32 1.1754944e-38, %v728_v17  ;;  %vm727_vm8 = vcmp.eq.f32.partialorder %v726_v19, 8.507059e+37 }
 0x229   : > { %899 = vst.msk [vmem:[%s1432_s27 + $0x10] sm:$0xff] %vm512_vm3, %v701_v5  ;;  %v705_v6 = vmul.f32 %v1080_v59, %v704_v2 }
 0x22b   : > { %v706_v7 = vadd.f32 %v1080_v59, %v705_v6 }
 0x22c   : > { %v1082_v8 = vpop.eup %1081 }
 0x22d   : > { %v710_v51 = vsel %vm709_vm2, %v1080_v59, %v706_v7  ;;  %v718_v53 = vmul.f32 %v1082_v8, %v623_v63  ;;  %v626_v13 = vpop.xlane.xlu0 %625  ;;  %vm723_vm5 = vweird.f32 %v1082_v8 }
 0x22e   : > { %v715_v57 = vsel %vm712_vm4, %v714_v11, %v710_v51  ;;  %1083 = vrcp.f32 %v626_v13  ;;  %vm724_vm7 = vmor %vm722_vm6, %vm723_vm5  ;;  %v743_v32 = vand.u32 2147483648, %v626_v13  ;;  %v741_v30 = vand.u32 2147483647, %v626_v13 }
 0x22f   : > { %v716_v10 = vmul.f32 %v1364_v15, %v715_v57  ;;  %v719_v16 = vsub.f32 1.0, %v718_v53  ;;  %vm737_vm10 = vweird.f32 %v626_v13 }
 0x230   : > { %v744_v40 = vor.u32 1.1754944e-38, %v743_v32  ;;  %vm742_vm12 = vcmp.eq.f32.partialorder %v741_v30, 8.507059e+37 }
 0x231   : > { %900 = vst.msk [vmem:[%s1432_s27 + $0x18] sm:$0xff] %vm512_vm3, %v716_v10  ;;  %v720_v18 = vmul.f32 %v1082_v8, %v719_v16 }
 0x233   : > { %v721_v21 = vadd.f32 %v1082_v8, %v720_v18 }
 0x234   : > { %v1084_v22 = vpop.eup %1083 }
 0x235   : > { %v725_v24 = vsel %vm724_vm7, %v1082_v8, %v721_v21  ;;  %v733_v26 = vmul.f32 %v1084_v22, %v626_v13  ;;  %v629_v28 = vpop.xlane.xlu1 %628  ;;  %vm738_vm9 = vweird.f32 %v1084_v22 }
 0x236   : > { %v730_v29 = vsel %vm727_vm8, %v729_v23, %v725_v24  ;;  %1085 = vrcp.f32 %v629_v28  ;;  %vm739_vm11 = vmor %vm737_vm10, %vm738_vm9  ;;  %v758_v36 = vand.u32 2147483648, %v629_v28  ;;  %v756_v50 = vand.u32 2147483647, %v629_v28 }
 0x237   : > { %v731_v15 = vmul.f32 %v1369_v20, %v730_v29  ;;  %v734_v31 = vsub.f32 1.0, %v733_v26  ;;  %vm752_vm14 = vweird.f32 %v629_v28 }
 0x238   : > { %v759_v39 = vor.u32 1.1754944e-38, %v758_v36  ;;  %vm757_vm0 = vcmp.eq.f32.partialorder %v756_v50, 8.507059e+37 }
 0x239   : > { %901 = vst.msk [vmem:[%s1432_s27 + $0x20] sm:$0xff] %vm512_vm3, %v731_v15  ;;  %v735_v34 = vmul.f32 %v1084_v22, %v734_v31 }
 0x23b   : > { %v736_v35 = vadd.f32 %v1084_v22, %v735_v34 }
 0x23c   : > { %v1086_v38 = vpop.eup %1085 }
 0x23d   : > { %v740_v41 = vsel %vm739_vm11, %v1084_v22, %v736_v35  ;;  %v748_v43 = vmul.f32 %v1086_v38, %v629_v28  ;;  %vm753_vm13 = vweird.f32 %v1086_v38 }
 0x23e   : > { %v745_v46 = vsel %vm742_vm12, %v744_v40, %v740_v41  ;;  %vm754_vm15 = vmor %vm752_vm14, %vm753_vm13 }
 0x23f   : > { %v746_v33 = vmul.f32 %v1374_v25, %v745_v46  ;;  %v749_v20 = vsub.f32 1.0, %v748_v43 }
 0x241   : > { %902 = vst.msk [vmem:[%s1432_s27 + $0x28] sm:$0xff] %vm512_vm3, %v746_v33  ;;  %v750_v47 = vmul.f32 %v1086_v38, %v749_v20 }
 0x243   : > { %v751_v52 = vadd.f32 %v1086_v38, %v750_v47  ;;  %v632_v0 = vpop.xlane.xlu2 %631 }
 0x244   : > { %1087 = vrcp.f32 %v632_v0  ;;  %v773_v62 = vand.u32 2147483648, %v632_v0  ;;  %v771_v63 = vand.u32 2147483647, %v632_v0  ;;  %vm767_vm2 = vweird.f32 %v632_v0 }
 0x245   : > { %v755_v54 = vsel %vm754_vm15, %v1086_v38, %v751_v52 }
 0x246   : > { %v760_v56 = vsel %vm757_vm0, %v759_v39, %v755_v54  ;;  %v774_v2 = vor.u32 1.1754944e-38, %v773_v62  ;;  %vm772_vm5 = vcmp.eq.f32.partialorder %v771_v63, 8.507059e+37 }
 0x247   : > { %v761_v58 = vmul.f32 %v1378_v27, %v760_v56 }
 0x249   : > { %903 = vst.msk [vmem:[%s1432_s27 + $0x30] sm:$0xff] %vm512_vm3, %v761_v58 }
 0x24a   : > { %v1088_v25 = vpop.eup %1087 }
 0x24b   : > { %v763_v42 = vmul.f32 %v1088_v25, %v632_v0  ;;  %v635_v59 = vpop.xlane.xlu0 %634  ;;  %vm768_vm1 = vweird.f32 %v1088_v25 }
 0x24c   : > { %1089 = vrcp.f32 %v635_v59  ;;  %vm769_vm4 = vmor %vm767_vm2, %vm768_vm1  ;;  %v788_v11 = vand.u32 2147483648, %v635_v59  ;;  %v786_v53 = vand.u32 2147483647, %v635_v59  ;;  %vm782_vm7 = vweird.f32 %v635_v59 }
 0x24d   : > { %v764_v61 = vsub.f32 1.0, %v763_v42 }
 0x24e   : > { %v789_v10 = vor.u32 1.1754944e-38, %v788_v11  ;;  %vm787_vm9 = vcmp.eq.f32.partialorder %v786_v53, 8.507059e+37 }
 0x24f   : > { %v765_v45 = vmul.f32 %v1088_v25, %v764_v61 }
 0x251   : > { %v766_v1 = vadd.f32 %v1088_v25, %v765_v45 }
 0x252   : > { %v1090_v5 = vpop.eup %1089 }
 0x253   : > { %v770_v4 = vsel %vm769_vm4, %v1088_v25, %v766_v1  ;;  %v778_v27 = vmul.f32 %v1090_v5, %v635_v59  ;;  %v638_v6 = vpop.xlane.xlu1 %637  ;;  %vm783_vm6 = vweird.f32 %v1090_v5 }
 0x254   : > { %v775_v48 = vsel %vm772_vm5, %v774_v2, %v770_v4  ;;  %1091 = vrcp.f32 %v638_v6  ;;  %vm784_vm8 = vmor %vm782_vm7, %vm783_vm6  ;;  %v803_v22 = vand.u32 2147483648, %v638_v6  ;;  %v801_v24 = vand.u32 2147483647, %v638_v6 }
 0x255   : > { %v776_v7 = vmul.f32 %v1384_v37, %v775_v48  ;;  %v779_v8 = vsub.f32 1.0, %v778_v27  ;;  %vm797_vm11 = vweird.f32 %v638_v6 }
 0x256   : > { %v804_v29 = vor.u32 1.1754944e-38, %v803_v22  ;;  %vm802_vm13 = vcmp.eq.f32.partialorder %v801_v24, 8.507059e+37 }
 0x257   : > { %904 = vst.msk [vmem:[%s1432_s27 + $0x38] sm:$0xff] %vm512_vm3, %v776_v7  ;;  %v780_v51 = vmul.f32 %v1090_v5, %v779_v8 }
 0x259   : > { %v781_v13 = vadd.f32 %v1090_v5, %v780_v51 }
 0x25a   : > { %v1092_v57 = vpop.eup %1091 }
 0x25b   : > { %v785_v16 = vsel %vm784_vm8, %v1090_v5, %v781_v13  ;;  %v793_v17 = vmul.f32 %v1092_v57, %v638_v6  ;;  %v641_v18 = vpop.xlane.xlu2 %640  ;;  %vm798_vm10 = vweird.f32 %v1092_v57 }
 0x25c   : > { %v790_v19 = vsel %vm787_vm9, %v789_v10, %v785_v16  ;;  %1093 = vrcp.f32 %v641_v18  ;;  %vm799_vm12 = vmor %vm797_vm11, %vm798_vm10  ;;  %v818_v35 = vand.u32 2147483648, %v641_v18  ;;  %v816_v40 = vand.u32 2147483647, %v641_v18 }
 0x25d   : > { %v791_v37 = vmul.f32 %v1389_v44, %v790_v19  ;;  %v794_v21 = vsub.f32 1.0, %v793_v17  ;;  %vm812_vm15 = vweird.f32 %v641_v18 }
 0x25e   : > { %v819_v46 = vor.u32 1.1754944e-38, %v818_v35  ;;  %vm817_vm1 = vcmp.eq.f32.partialorder %v816_v40, 8.507059e+37 }
 0x25f   : > { %905 = vst.msk [vmem:[%s1432_s27 + $0x40] sm:$0xff] %vm512_vm3, %v791_v37  ;;  %v795_v23 = vmul.f32 %v1092_v57, %v794_v21 }
 0x261   : > { %v796_v26 = vadd.f32 %v1092_v57, %v795_v23 }
 0x262   : > { %v1094_v28 = vpop.eup %1093 }
 0x263   : > { %v800_v15 = vsel %vm799_vm12, %v1092_v57, %v796_v26  ;;  %v808_v31 = vmul.f32 %v1094_v28, %v641_v18  ;;  %v644_v32 = vpop.xlane.xlu0 %643  ;;  %vm813_vm14 = vweird.f32 %v1094_v28 }
 0x264   : > { %v805_v34 = vsel %vm802_vm13, %v804_v29, %v800_v15  ;;  %1095 = vrcp.f32 %v644_v32  ;;  %vm814_vm0 = vmor %vm812_vm15, %vm813_vm14  ;;  %v833_v52 = vand.u32 2147483648, %v644_v32  ;;  %v831_v39 = vand.u32 2147483647, %v644_v32 }
 0x265   : > { %v806_v44 = vmul.f32 %v1394_v49, %v805_v34  ;;  %v809_v30 = vsub.f32 1.0, %v808_v31  ;;  %vm827_vm4 = vweird.f32 %v644_v32 }
 0x266   : > { %v834_v58 = vor.u32 1.1754944e-38, %v833_v52  ;;  %vm832_vm6 = vcmp.eq.f32.partialorder %v831_v39, 8.507059e+37 }
 0x267   : > { %906 = vst.msk [vmem:[%s1432_s27 + $0x48] sm:$0xff] %vm512_vm3, %v806_v44  ;;  %v810_v38 = vmul.f32 %v1094_v28, %v809_v30 }
 0x269   : > { %v811_v41 = vadd.f32 %v1094_v28, %v810_v38 }
 0x26a   : > { %v1096_v43 = vpop.eup %1095 }
 0x26b   : > { %v815_v33 = vsel %vm814_vm0, %v1094_v28, %v811_v41  ;;  %v823_v20 = vmul.f32 %v1096_v43, %v644_v32  ;;  %v647_v36 = vpop.xlane.xlu1 %646  ;;  %vm828_vm2 = vweird.f32 %v1096_v43 }
 0x26c   : > { %v820_v47 = vsel %vm817_vm1, %v819_v46, %v815_v33  ;;  %1097 = vrcp.f32 %v647_v36  ;;  %vm829_vm5 = vmor %vm827_vm4, %vm828_vm2  ;;  %v848_v63 = vand.u32 2147483648, %v647_v36  ;;  %v846_v5 = vand.u32 2147483647, %v647_v36 }
 0x26d   : > { %v821_v49 = vmul.f32 %v1399_v55, %v820_v47  ;;  %v824_v50 = vsub.f32 1.0, %v823_v20  ;;  %vm842_vm8 = vweird.f32 %v647_v36 }
 0x26e   : > { %v849_v27 = vor.u32 1.1754944e-38, %v848_v63  ;;  %vm847_vm10 = vcmp.eq.f32.partialorder %v846_v5, 8.507059e+37 }
 0x26f   : > { %907 = vst.msk [vmem:[%s1432_s27 + $0x50] sm:$0xff] %vm512_vm3, %v821_v49  ;;  %v825_v0 = vmul.f32 %v1096_v43, %v824_v50 }
 0x271   : > { %v826_v54 = vadd.f32 %v1096_v43, %v825_v0 }
 0x272   : > { %v1098_v56 = vpop.eup %1097 }
 0x273   : > { %v830_v25 = vsel %vm829_vm5, %v1096_v43, %v826_v54  ;;  %v838_v42 = vmul.f32 %v1098_v56, %v647_v36  ;;  %v650_v59 = vpop.xlane.xlu2 %649  ;;  %vm843_vm7 = vweird.f32 %v1098_v56 }
 0x274   : > { %v835_v61 = vsel %vm832_vm6, %v834_v58, %v830_v25  ;;  %1099 = vrcp.f32 %v650_v59  ;;  %v656_v55 = vpop.xlane.xlu1 %655  ;;  %vm844_vm9 = vmor %vm842_vm8, %vm843_vm7  ;;  %v863_v13 = vand.u32 2147483648, %v650_v59  ;;  %v861_v16 = vand.u32 2147483647, %v650_v59 }
 0x275   : > { %v836_v62 = vmul.f32 %v1404_v60, %v835_v61  ;;  %v839_v45 = vsub.f32 1.0, %v838_v42  ;;  %1101 = vrcp.f32 %v656_v55  ;;  %v893_v17 = vand.u32 2147483648, %v656_v55 }
 0x276   : > { %v891_v19 = vand.u32 2147483647, %v656_v55  ;;  %vm857_vm13 = vweird.f32 %v650_v59  ;;  %v864_v22 = vor.u32 1.1754944e-38, %v863_v13  ;;  %vm887_vm15 = vweird.f32 %v656_v55 }
 0x277   : > { %908 = vst.msk [vmem:[%s1432_s27 + $0x58] sm:$0xff] %vm512_vm3, %v836_v62  ;;  %v840_v1 = vmul.f32 %v1098_v56, %v839_v45  ;;  %vm862_vm0 = vcmp.eq.f32.partialorder %v861_v16, 8.507059e+37  ;;  %v894_v24 = vor.u32 1.1754944e-38, %v893_v17 }
 0x278   : > { %vm892_vm2 = vcmp.eq.f32.partialorder %v891_v19, 8.507059e+37 }
 0x279   : > { %v841_v2 = vadd.f32 %v1098_v56, %v840_v1 }
 0x27a   : > { %v1100_v4 = vpop.eup %1099 }
 0x27b   : > { %v1102_v6 = vpop.eup %1101  ;;  %v845_v48 = vsel %vm844_vm9, %v1098_v56, %v841_v2  ;;  %v853_v7 = vmul.f32 %v1100_v4, %v650_v59  ;;  %v653_v8 = vpop.xlane.xlu0 %652  ;;  %vm858_vm11 = vweird.f32 %v1100_v4 }
 0x27c   : > { %v850_v60 = vsel %vm847_vm10, %v849_v27, %v845_v48  ;;  %v883_v11 = vmul.f32 %v1102_v6, %v656_v55  ;;  %1103 = vrcp.f32 %v653_v8  ;;  %vm888_vm12 = vweird.f32 %v1102_v6  ;;  %vm859_vm14 = vmor %vm857_vm13, %vm858_vm11 }
 0x27d   : > { %v851_v51 = vmul.f32 %v1410_v3, %v850_v60  ;;  %v854_v53 = vsub.f32 1.0, %v853_v7  ;;  %vm889_vm1 = vmor %vm887_vm15, %vm888_vm12  ;;  %v878_v44 = vand.u32 2147483648, %v653_v8  ;;  %v876_v35 = vand.u32 2147483647, %v653_v8 }
 0x27e   : > { %v884_v57 = vsub.f32 1.0, %v883_v11  ;;  %vm872_vm5 = vweird.f32 %v653_v8 }
 0x27f   : > { %909 = vst.msk [vmem:[%s1432_s27 + $0x60] sm:$0xff] %vm512_vm3, %v851_v51  ;;  %v855_v10 = vmul.f32 %v1100_v4, %v854_v53  ;;  %v879_v40 = vor.u32 1.1754944e-38, %v878_v44  ;;  %vm877_vm7 = vcmp.eq.f32.partialorder %v876_v35, 8.507059e+37 }
 0x280   : > { %v885_v18 = vmul.f32 %v1102_v6, %v884_v57 }
 0x281   : > { %v856_v37 = vadd.f32 %v1100_v4, %v855_v10 }
 0x282   : > { %v1104_v21 = vpop.eup %1103  ;;  %v886_v23 = vadd.f32 %v1102_v6, %v885_v18 }
 0x283   : > { %v860_v3 = vsel %vm859_vm14, %v1100_v4, %v856_v37  ;;  %v868_v26 = vmul.f32 %v1104_v21, %v653_v8  ;;  %vm873_vm4 = vweird.f32 %v1104_v21 }
 0x284   : > { %v865_v28 = vsel %vm862_vm0, %v864_v22, %v860_v3  ;;  %v890_v29 = vsel %vm889_vm1, %v1102_v6, %v886_v23  ;;  %vm874_vm6 = vmor %vm872_vm5, %vm873_vm4 }
 0x285   : > { %v866_v15 = vmul.f32 %v1415_v9, %v865_v28  ;;  %v895_v31 = vsel %vm892_vm2, %v894_v24, %v890_v29  ;;  %v869_v32 = vsub.f32 1.0, %v868_v26 }
 0x286   : > { %v896_v34 = vmul.f32 %v1417_v12, %v895_v31 }
 0x287   : > { %910 = vst.msk [vmem:[%s1432_s27 + $0x68] sm:$0xff] %vm512_vm3, %v866_v15  ;;  %v870_v30 = vmul.f32 %v1104_v21, %v869_v32 }
 0x288   : > { %912 = vst.msk [vmem:[%s1432_s27 + $0x78] sm:$0xff] %vm512_vm3, %v896_v34 }
 0x289   : > { %v871_v38 = vadd.f32 %v1104_v21, %v870_v30 }
 0x28b   : > { %v875_v41 = vsel %vm874_vm6, %v1104_v21, %v871_v38 }
 0x28c   : > { %v880_v9 = vsel %vm877_vm7, %v879_v40, %v875_v41 }
 0x28d   : > { %v881_v43 = vmul.f32 %v1423_v14, %v880_v9 }
 0x28f   : > { %911 = vst.msk [vmem:[%s1432_s27 + $0x70] sm:$0xff] %vm512_vm3, %v881_v43 }
 0x290 PF: > { %s15_s18 = sadd.s32 1, %s1111_s18  }
 0x291   : > { %p12_p4 = scmp.ge.s32.totalorder %s15_s18, 5  }
 0x293   :  { %14 = sbr.rel (!%p12_p4) target bundleno = 1 (0x1), region = 70 }

</bundles_post_ra>
